<compile_context>
chip_gen: v6e
topology: v6e:2x2x1
jax: 0.10.0
libtpu: 0.0.40
codegen_flags: <defaults>
</compile_context>

<pallas_src>
import jax
import jax.numpy as jnp
from jax import lax
from jax.experimental import pallas as pl
from jax.experimental.pallas import tpu as pltpu


# ----------------------------- Pallas kernel --------------------------------
# Contract the last dim of both operands: (M, K) x (N, K) -> (M, N).
_DN_LAST = (((1,), (1,)), ((), ()))


def _make_widedeep_kernel(n_dense):
    def kernel(x_ref, w1_ref, b1_ref, w2_ref, b2_ref,
               wzd_ref, wzw_ref, bz_ref, out_ref):
        x = x_ref[...]                                   # (TB, d_in) batch-major
        d_in = x_ref.shape[1]

        # Deep path, feature-major: h = W @ x^T + b (batch on lanes).
        h = lax.dot_general(w1_ref[...], x, _DN_LAST,
                            preferred_element_type=jnp.float32)   # (h1, TB)
        h = jnp.maximum(h + b1_ref[...], 0.0)
        h = jnp.dot(w2_ref[...], h, preferred_element_type=jnp.float32)
        h = jnp.maximum(h + b2_ref[...], 0.0)                      # (h2, TB)

        # Heads: deep over the hidden state, wide over the raw dense features
        # (the trailing n_dense columns of the dnn input).  The 0.5 scale and
        # both biases are folded into wzd / wzw / bz on the host.
        z = jnp.dot(wzd_ref[...], h, preferred_element_type=jnp.float32)  # (1, TB)
        z = z + lax.dot_general(wzw_ref[...], x[:, d_in - n_dense:], _DN_LAST,
                                preferred_element_type=jnp.float32)
        out_ref[...] = jax.nn.sigmoid(z + bz_ref[...]).astype(out_ref.dtype)

    return kernel


def _batch_tile(B):
    """Pick a lane tile over the batch and the (possibly padded) batch size."""
    if B <= 1024:
        return B, B                       # single tile, no padding needed
    for tb in (2048, 1024, 512, 256, 128):
        if B % tb == 0:
            return tb, B
    tb = 512
    return tb, ((B + tb - 1) // tb) * tb


def widedeep_forward(dnn_input, kparams, n_dense):
    """Fused Wide&Deep forward. dnn_input: (B, d_in) f32 -> (B, 1) f32."""
    B, d_in = dnn_input.shape
    h1 = kparams["w1"].shape[0]
    h2 = kparams["w2"].shape[0]

    TB, Bp = _batch_tile(B)
    x = dnn_input
    if Bp != B:
        x = jnp.pad(x, ((0, Bp - B), (0, 0)))

    kernel = _make_widedeep_kernel(n_dense)
    out = pl.pallas_call(
        kernel,
        out_shape=jax.ShapeDtypeStruct((1, Bp), jnp.float32),
        grid=(Bp // TB,),
        in_specs=[
            pl.BlockSpec((TB, d_in), lambda i: (i, 0)),        # activations (tiled)
            pl.BlockSpec((h1, d_in), lambda i: (0, 0)),        # resident weights
            pl.BlockSpec((h1, 1), lambda i: (0, 0)),
            pl.BlockSpec((h2, h1), lambda i: (0, 0)),
            pl.BlockSpec((h2, 1), lambda i: (0, 0)),
            pl.BlockSpec((1, h2), lambda i: (0, 0)),           # deep head (0.5*wf)
            pl.BlockSpec((1, n_dense), lambda i: (0, 0)),      # wide head (0.5*ww)
            pl.BlockSpec((1, 1), lambda i: (0, 0)),            # fused bias
        ],
        out_specs=pl.BlockSpec((1, TB), lambda i: (0, i)),     # lane-dense output
        compiler_params=pltpu.CompilerParams(
            dimension_semantics=("parallel",)),
    )(x, kparams["w1"], kparams["b1c"], kparams["w2"], kparams["b2c"],
      kparams["wzd"], kparams["wzw"], kparams["bz"])

    return out[0, :B].reshape(B, 1)


# ----------------------------- Model wrapper --------------------------------
class TTPallas:
    def __init__(self, feature_columns, hidden_units, key):
        self.dense_cols, self.sparse_cols = feature_columns
        self.n_dense = len(self.dense_cols)
        self.n_sparse = len(self.sparse_cols)
        self.embed_dim = self.sparse_cols[0]["embed_dim"]

        hidden_units = list(hidden_units)
        hidden_units.insert(0, self.n_dense + self.n_sparse * self.embed_dim)
        assert len(hidden_units) == 3, "this script wires a 2-layer Dnn"
        d_in, h1, h2 = hidden_units
        self.d_in, self.h1, self.h2 = d_in, h1, h2

        ks = jax.random.split(key, 16)
        # Embedding tables.
        self.embed_tables = [
            0.1 * jax.random.normal(ks[i],
                                    (feat["feat_num"], feat["embed_dim"]),
                                    dtype=jnp.float32)
            for i, feat in enumerate(self.sparse_cols)
        ]
        # Deterministic synthetic params, stored in PyTorch layout W=[out,in].
        self.params = {
            "w1": 0.1 * jax.random.normal(ks[8], (h1, d_in), jnp.float32),
            "b1": 0.1 * jax.random.normal(ks[9], (h1,), jnp.float32),
            "w2": 0.1 * jax.random.normal(ks[10], (h2, h1), jnp.float32),
            "b2": 0.1 * jax.random.normal(ks[11], (h2,), jnp.float32),
            "wf": 0.1 * jax.random.normal(ks[12], (1, h2), jnp.float32),
            "bf": 0.1 * jax.random.normal(ks[13], (1,), jnp.float32),
            "ww": 0.1 * jax.random.normal(ks[14], (1, self.n_dense), jnp.float32),
            "bw": 0.1 * jax.random.normal(ks[15], (1,), jnp.float32),
        }
        p = self.params
        # Kernel-ready params: column biases for the feature-major layout, plus
        # the pre-scaled wide/deep heads (0.5 scale and both biases folded in).
        self.kparams = {
            "w1": p["w1"],                                   # (h1, d_in)
            "b1c": p["b1"].reshape(h1, 1),
            "w2": p["w2"],                                   # (h2, h1)
            "b2c": p["b2"].reshape(h2, 1),
            "wzd": 0.5 * p["wf"],                            # (1, h2)
            "wzw": 0.5 * p["ww"],                            # (1, n_dense)
            "bz": (0.5 * (p["bf"] + p["bw"])).reshape(1, 1),
        }

    def __call__(self, x):
        # x: [B, n_dense + n_sparse]; trailing sparse columns hold integer ids.
        dense_input = x[:, : self.n_dense]
        sparse_inputs = x[:, self.n_dense:].astype(jnp.int32)
        # TODO(synk): at production batch sizes / vocab sizes, fuse this
        # embedding gather + concat into the kernel (scalar-prefetch ids + DMA
        # row gather) to avoid materializing dnn_input in HBM.
        sparse_embeds = jnp.concatenate(
            [jnp.take(self.embed_tables[i], sparse_inputs[:, i], axis=0)
             for i in range(self.n_sparse)],
            axis=-1,
        )
        dnn_input = jnp.concatenate([sparse_embeds, dense_input], axis=-1)
        return widedeep_forward(dnn_input, self.kparams, self.n_dense)


# ----------------------- Pure-JAX reference (check) --------------------------
def reference_forward(model, x):
    dense_input = x[:, : model.n_dense]
    sparse_inputs = x[:, model.n_dense:].astype(jnp.int32)
    sparse_embeds = jnp.concatenate(
        [jnp.take(model.embed_tables[i], sparse_inputs[:, i], axis=0)
         for i in range(model.n_sparse)],
        axis=-1,
    )
    dnn_input = jnp.concatenate([sparse_embeds, dense_input], axis=-1)
    p = model.params
    h = jnp.maximum(dnn_input @ p["w1"].T + p["b1"], 0.0)
    h = jnp.maximum(h @ p["w2"].T + p["b2"], 0.0)
    deep = h @ p["wf"].T + p["bf"]
    wide = dense_input @ p["ww"].T + p["bw"]
    return jax.nn.sigmoid(0.5 * (wide + deep))


if __name__ == "__main__":
    key = jax.random.PRNGKey(0)
    k_dense, k_sparse, k_model = jax.random.split(key, 3)

    B = 8
    n_dense = 4
    n_sparse = 4
    feat_num = 20
    embed_dim = 8
    hidden_units = [64, 32]

    dense_cols = [{"feat": f"d{i}"} for i in range(n_dense)]
    sparse_cols = [{"feat": f"s{i}", "feat_num": feat_num,
                    "embed_dim": embed_dim} for i in range(n_sparse)]

    model = TTPallas((dense_cols, sparse_cols), hidden_units, k_model)

    dense_part = jax.random.normal(k_dense, (B, n_dense), jnp.float32)
    sparse_part = jax.random.randint(k_sparse, (B, n_sparse), 0, feat_num
                                     ).astype(jnp.float32)
    x = jnp.concatenate([dense_part, sparse_part], axis=-1)  # [B, n_dense+n_sparse]

    out = model(x)
    out = jax.block_until_ready(out)

    ref = reference_forward(model, x)
    assert out.shape == (B, 1)
    assert jnp.allclose(out, ref, atol=1e-5, rtol=1e-5), (out, ref)

    print("KERNEL_OK")
</pallas_src>

<mosaic_0001>
module attributes {stable_mosaic.version = 11 : i64} {
  func.func @kernel(%arg0: i32, %arg1: memref<8x36xf32, #tpu.memory_space<vmem>>, %arg2: memref<64x36xf32, #tpu.memory_space<vmem>>, %arg3: memref<64x1xf32, #tpu.memory_space<vmem>>, %arg4: memref<32x64xf32, #tpu.memory_space<vmem>>, %arg5: memref<32x1xf32, #tpu.memory_space<vmem>>, %arg6: memref<1x32xf32, #tpu.memory_space<vmem>>, %arg7: memref<1x4xf32, #tpu.memory_space<vmem>>, %arg8: memref<1x1xf32, #tpu.memory_space<vmem>>, %arg9: memref<1x8xf32, #tpu.memory_space<vmem>>) attributes {dimension_semantics = [#tpu.dimension_semantics<parallel>], iteration_bounds = array<i64: 1>, scalar_prefetch = 0 : i64, scratch_operands = 0 : i64, tpu.core_type = #tpu.core_type<tc>, window_params = [{transform_indices = @transform_0, window_bounds = array<i64: 8, 36>}, {pipeline_mode = #tpu.pipeline_mode<synchronous>, transform_indices = @transform_1, window_bounds = array<i64: 64, 36>}, {pipeline_mode = #tpu.pipeline_mode<synchronous>, transform_indices = @transform_2, window_bounds = array<i64: 64, 1>}, {pipeline_mode = #tpu.pipeline_mode<synchronous>, transform_indices = @transform_3, window_bounds = array<i64: 32, 64>}, {pipeline_mode = #tpu.pipeline_mode<synchronous>, transform_indices = @transform_4, window_bounds = array<i64: 32, 1>}, {pipeline_mode = #tpu.pipeline_mode<synchronous>, transform_indices = @transform_5, window_bounds = array<i64: 1, 32>}, {pipeline_mode = #tpu.pipeline_mode<synchronous>, transform_indices = @transform_6, window_bounds = array<i64: 1, 4>}, {pipeline_mode = #tpu.pipeline_mode<synchronous>, transform_indices = @transform_7, window_bounds = array<i64: 1, 1>}, {transform_indices = @transform_8, window_bounds = array<i64: 1, 8>}]} {
    %c0 = arith.constant 0 : index
    %c0_0 = arith.constant 0 : index
    %0 = vector.load %arg1[%c0, %c0_0] : memref<8x36xf32, #tpu.memory_space<vmem>>, vector<8x36xf32>
    %c0_1 = arith.constant 0 : index
    %c0_2 = arith.constant 0 : index
    %1 = vector.load %arg2[%c0_1, %c0_2] : memref<64x36xf32, #tpu.memory_space<vmem>>, vector<64x36xf32>
    %cst = arith.constant dense<0.000000e+00> : vector<64x8xf32>
    %2 = tpu.matmul %1, %0, %cst {dimension_numbers = #tpu.dot_dimension_numbers<[1], [1], [0], [0], [0, 0, 1, 0], [], []>} : vector<64x36xf32>, vector<8x36xf32>, vector<64x8xf32> -> vector<64x8xf32>
    %c0_3 = arith.constant 0 : index
    %c0_4 = arith.constant 0 : index
    %3 = vector.load %arg3[%c0_3, %c0_4] : memref<64x1xf32, #tpu.memory_space<vmem>>, vector<64x1xf32>
    %4 = vector.broadcast %3 : vector<64x1xf32> to vector<64x8xf32>
    %5 = arith.addf %2, %4 : vector<64x8xf32>
    %cst_5 = arith.constant 0.000000e+00 : f32
    %6 = vector.broadcast %cst_5 : f32 to vector<64x8xf32>
    %7 = arith.maximumf %5, %6 : vector<64x8xf32>
    %c0_6 = arith.constant 0 : index
    %c0_7 = arith.constant 0 : index
    %8 = vector.load %arg4[%c0_6, %c0_7] : memref<32x64xf32, #tpu.memory_space<vmem>>, vector<32x64xf32>
    %cst_8 = arith.constant dense<0.000000e+00> : vector<32x8xf32>
    %9 = tpu.matmul %8, %7, %cst_8 {dimension_numbers = #tpu.dot_dimension_numbers<[1], [0], [0], [1], [0, 0, 1, 1], [], []>} : vector<32x64xf32>, vector<64x8xf32>, vector<32x8xf32> -> vector<32x8xf32>
    %c0_9 = arith.constant 0 : index
    %c0_10 = arith.constant 0 : index
    %10 = vector.load %arg5[%c0_9, %c0_10] : memref<32x1xf32, #tpu.memory_space<vmem>>, vector<32x1xf32>
    %11 = vector.broadcast %10 : vector<32x1xf32> to vector<32x8xf32>
    %12 = arith.addf %9, %11 : vector<32x8xf32>
    %cst_11 = arith.constant 0.000000e+00 : f32
    %13 = vector.broadcast %cst_11 : f32 to vector<32x8xf32>
    %14 = arith.maximumf %12, %13 : vector<32x8xf32>
    %c0_12 = arith.constant 0 : index
    %c0_13 = arith.constant 0 : index
    %15 = vector.load %arg6[%c0_12, %c0_13] : memref<1x32xf32, #tpu.memory_space<vmem>>, vector<1x32xf32>
    %cst_14 = arith.constant dense<0.000000e+00> : vector<1x8xf32>
    %16 = tpu.matmul %15, %14, %cst_14 {dimension_numbers = #tpu.dot_dimension_numbers<[1], [0], [0], [1], [0, 0, 1, 1], [], []>} : vector<1x32xf32>, vector<32x8xf32>, vector<1x8xf32> -> vector<1x8xf32>
    %c0_15 = arith.constant 0 : index
    %c0_16 = arith.constant 0 : index
    %17 = vector.load %arg7[%c0_15, %c0_16] : memref<1x4xf32, #tpu.memory_space<vmem>>, vector<1x4xf32>
    %18 = vector.extract_strided_slice %0 {offsets = [0, 32], sizes = [8, 4], strides = [1, 1]} : vector<8x36xf32> to vector<8x4xf32>
    %cst_17 = arith.constant dense<0.000000e+00> : vector<1x8xf32>
    %19 = tpu.matmul %17, %18, %cst_17 {dimension_numbers = #tpu.dot_dimension_numbers<[1], [1], [0], [0], [0, 0, 1, 0], [], []>} : vector<1x4xf32>, vector<8x4xf32>, vector<1x8xf32> -> vector<1x8xf32>
    %20 = arith.addf %16, %19 : vector<1x8xf32>
    %c0_18 = arith.constant 0 : index
    %c0_19 = arith.constant 0 : index
    %21 = vector.load %arg8[%c0_18, %c0_19] : memref<1x1xf32, #tpu.memory_space<vmem>>, vector<1x1xf32>
    %22 = vector.broadcast %21 : vector<1x1xf32> to vector<1x8xf32>
    %23 = arith.addf %20, %22 : vector<1x8xf32>
    %24 = arith.negf %23 : vector<1x8xf32>
    %25 = math.exp %24 : vector<1x8xf32>
    %cst_20 = arith.constant 1.000000e+00 : f32
    %26 = vector.broadcast %cst_20 : f32 to vector<1x8xf32>
    %27 = arith.addf %26, %25 : vector<1x8xf32>
    %28 = arith.divf %26, %27 : vector<1x8xf32>
    %c0_21 = arith.constant 0 : index
    %c0_22 = arith.constant 0 : index
    %29 = vector.load %arg9[%c0_21, %c0_22] : memref<1x8xf32, #tpu.memory_space<vmem>>, vector<1x8xf32>
    tpu.vector_store %arg9[%c0_21, %c0_22], %28 {strides = array<i32>} : memref<1x8xf32, #tpu.memory_space<vmem>>, vector<1x8xf32>,
    return
  }
  func.func @transform_0(%arg0: i32) -> (i32, i32) {
    %c0_i32 = arith.constant 0 : i32
    %c0_i32_0 = arith.constant 0 : i32
    return %arg0, %c0_i32 : i32, i32
  }
  func.func @transform_1(%arg0: i32) -> (i32, i32) {
    %c0_i32 = arith.constant 0 : i32
    %c0_i32_0 = arith.constant 0 : i32
    %c0_i32_1 = arith.constant 0 : i32
    return %c0_i32, %c0_i32_0 : i32, i32
  }
  func.func @transform_2(%arg0: i32) -> (i32, i32) {
    %c0_i32 = arith.constant 0 : i32
    %c0_i32_0 = arith.constant 0 : i32
    %c0_i32_1 = arith.constant 0 : i32
    return %c0_i32, %c0_i32_0 : i32, i32
  }
  func.func @transform_3(%arg0: i32) -> (i32, i32) {
    %c0_i32 = arith.constant 0 : i32
    %c0_i32_0 = arith.constant 0 : i32
    %c0_i32_1 = arith.constant 0 : i32
    return %c0_i32, %c0_i32_0 : i32, i32
  }
  func.func @transform_4(%arg0: i32) -> (i32, i32) {
    %c0_i32 = arith.constant 0 : i32
    %c0_i32_0 = arith.constant 0 : i32
    %c0_i32_1 = arith.constant 0 : i32
    return %c0_i32, %c0_i32_0 : i32, i32
  }
  func.func @transform_5(%arg0: i32) -> (i32, i32) {
    %c0_i32 = arith.constant 0 : i32
    %c0_i32_0 = arith.constant 0 : i32
    %c0_i32_1 = arith.constant 0 : i32
    return %c0_i32, %c0_i32_0 : i32, i32
  }
  func.func @transform_6(%arg0: i32) -> (i32, i32) {
    %c0_i32 = arith.constant 0 : i32
    %c0_i32_0 = arith.constant 0 : i32
    %c0_i32_1 = arith.constant 0 : i32
    return %c0_i32, %c0_i32_0 : i32, i32
  }
  func.func @transform_7(%arg0: i32) -> (i32, i32) {
    %c0_i32 = arith.constant 0 : i32
    %c0_i32_0 = arith.constant 0 : i32
    %c0_i32_1 = arith.constant 0 : i32
    return %c0_i32, %c0_i32_0 : i32, i32
  }
  func.func @transform_8(%arg0: i32) -> (i32, i32) {
    %c0_i32 = arith.constant 0 : i32
    %c0_i32_0 = arith.constant 0 : i32
    return %c0_i32, %arg0 : i32, i32
  }
}

</mosaic_0001>

<bundles_post_ra>
// kernel: tpu_custom_call.1
= control target key start
LH: loop header
LB: loop body
LE: loop exit
PB: predicated region body
PF: predicated region fallthrough
CT: control target
= control target key end

     0   :  { %s828_s0 = inlined_call_operand.vmem [shape: f32[8,36], index: 0, kind: input, shape index: {}]   ;;  %s829_s1 = inlined_call_operand.vmem [shape: f32[64,36], index: 1, kind: input, shape index: {}]   ;;  %s830_s2 = inlined_call_operand.vmem [shape: f32[64,1], index: 2, kind: input, shape index: {}]   ;;  %s831_s3 = inlined_call_operand.vmem [shape: f32[32,64], index: 3, kind: input, shape index: {}]   ;;  %s832_s4 = inlined_call_operand.vmem [shape: f32[32,1], index: 4, kind: input, shape index: {}]   ;;  %s833_s5 = inlined_call_operand.vmem [shape: f32[1,32], index: 5, kind: input, shape index: {}]   ;;  %s834_s6 = inlined_call_operand.vmem [shape: f32[1,4], index: 6, kind: input, shape index: {}]   ;;  %s835_s7 = inlined_call_operand.<no memory space> [shape: f32[1,1], index: 7, kind: input, shape index: {}]   ;;  %s836_s8 = inlined_call_operand.hbm [shape: f32[1,8], index: 8, kind: output, shape index: {}]  }
   0x1   :  { %v13_v0 = vstv %s835_s7 }
   0x2   :  { %14 = vst [vmem:[#allocation2] sm:$0x1] %v13_v0 }
   0x3   :  { %v32_v1 = vld [vmem:[%s828_s0] sm:$0xff]  ;;  %vm89_vm0 = vcmask 293888   ;;  %v34_v3 = vld [vmem:[%s829_s1 + $0x8] sm:$0xff]  ;;  %v677_v4 = vmov 0   ;;  %v35_v5 = vld [vmem:[%s829_s1 + $0x10] sm:$0xff] }
   0x4   :  { %v33_v2 = vld [vmem:[%s829_s1] sm:$0xff]  ;;  %592 = vmatprep.subr.msk.mxu0 %vm89_vm0, %v32_v1  ;;  %649 = vset.pattern.permute.xlu0 %v677_v4  ;;  %v48_v6 = vld [vmem:[%s830_s2 + $0x38] sm:$0xff]  ;;  %v46_v7 = vld [vmem:[%s830_s2 + $0x28] sm:$0xff] }
   0x5   :  { %594 = vmatprep.mubr.msk.f32.mxu0 %vm89_vm0, %v33_v2  ;;  %593 = vmatpush3.xpose.msk.msra.mxu0 %vm89_vm0, %v32_v1  ;;  %v47_v8 = vld [vmem:[%s830_s2 + $0x30] sm:$0xff]  ;;  %v45_v9 = vld [vmem:[%s830_s2 + $0x20] sm:$0xff]  ;;  %v36_v10 = vld [vmem:[%s829_s1 + $0x18] sm:$0xff] }
   0x6   :  { %650 = vset.pattern.permute.xlu1 %v677_v4  ;;  %86 = vperm.xlu0 %649, %v48_v6   ;;  %v37_v11 = vld [vmem:[%s829_s1 + $0x20] sm:$0xff] }
   0x7   :  { %76 = vperm.xlu1 %650, %v46_v7  }
   0x8   :  { %595 = vmatmul.mubr.msk.f32.vlgmr.msra.gmra.mxu0 %vm89_vm0, %v34_v3 }
   0x9   :  { %597 = vmatprep.mubr.msk.f32.mxu0 %vm89_vm0, %v35_v5 }
   0xa   :  { %15 = vsyncpa [#allocation4], 0  ;;  %81 = vperm.xlu0 %649, %v47_v8   ;;  %v44_v12 = vld [vmem:[%s830_s2 + $0x18] sm:$0xff]  ;;  %v43_v13 = vld [vmem:[%s830_s2 + $0x10] sm:$0xff]  ;;  %vm258_vm1 = vcmask 523264   ;;  %s678_s23 = smov 96  }
   0xb   :  { %71 = vperm.xlu1 %650, %v45_v9   ;;  %v38_v14 = vld [vmem:[%s829_s1 + $0x28] sm:$0xff]  ;;  %v39_v15 = vld [vmem:[%s829_s1 + $0x30] sm:$0xff]  ;;  %v41_v17 = vld [vmem:[%s830_s2] sm:$0xff]  ;;  %vm364_vm2 = vcmask 31744   ;;  %v679_v63 = vmov 0.0   ;;  %vm680_vm3 = vmmov 0  }
   0xc   :  { %598 = vmatmul.mubr.msk.f32.gmra.mxu0 %vm89_vm0, %v36_v10  ;;  %v42_v16 = vld [vmem:[%s830_s2 + $0x8] sm:$0xff]  ;;  %v40_v18 = vld [vmem:[%s829_s1 + $0x38] sm:$0xff]  ;;  %v236_v20 = vld [vmem:[%s832_s4 + $0x10] sm:$0xff]  ;;  %628 = vmatprep.subr.mxu0 %v679_v63  ;;  %vm440_vm4 = vcmask 261120   ;;  %vm531_vm5 = vcmask 57344  }
   0xd   :  { %600 = vmatprep.mubr.msk.f32.mxu0 %vm89_vm0, %v37_v11  ;;  %v237_v19 = vld [vmem:[%s832_s4 + $0x18] sm:$0xff]  ;;  %v235_v21 = vld [vmem:[%s832_s4 + $0x8] sm:$0xff]  ;;  %v234_v22 = vld [vmem:[%s832_s4] sm:$0xff] }
   0xe   :  { %66 = vperm.xlu0 %649, %v44_v12   ;;  %v514_v23 = vld [vmem:[#allocation2] sm:$0x1]  ;;  %v231_v57 = vld [vmem:[%s831_s3 + $0x8] sm:$0xff]  ;;  %v232_v58 = vld [vmem:[%s831_s3 + $0x10] sm:$0xff] }
   0xf   :  { %61 = vperm.xlu1 %650, %v43_v13   ;;  %v230_v24 = vld [vmem:[%s831_s3] sm:$0xff]  ;;  %v233_v59 = vld [vmem:[%s831_s3 + $0x18] sm:$0xff] }
  0x10   :  { %601 = vmatmul.mubr.msk.f32.gmra.mxu0 %vm89_vm0, %v38_v14  ;;  %622 = vmatprep.mubr.msk.f32.mxu1 %vm258_vm1, %v230_v24  ;;  %v361_v0 = vld [vmem:[%s834_s6] sm:$0x1] }
  0x11   :  { %603 = vmatprep.mubr.msk.f32.mxu0 %vm89_vm0, %v39_v15  ;;  %v360_v15 = vld [vmem:[%s833_s5] sm:$0x1]  ;;  %s681_s5 = smov [#allocation3]  }
  0x12   :  { %56 = vperm.xlu0 %649, %v42_v16   ;;  %s539_s9 = sshll.u32 %s681_s5, 4  ;;  %s540_s9 = int_to_ptr.vmem [resolvable:$true] %s539_s9 }
  0x13   :  { %51 = vperm.xlu1 %650, %v41_v17   ;;  %s655_s10 = scalar_lea.vmem %s540_s9, 16  ;;  %s659_s11 = scalar_lea.vmem %s540_s9, 32 }
  0x14   :  { %604 = vmatmul.mubr.msk.f32.gmra.mxu0 %vm89_vm0, %v40_v18  ;;  %v520_v18 = vlaneseq  ;;  %p656_p0 = scmp.ne.s32.totalorder %s540_s9, %s655_s10  ;;  %p660_p1 = scmp.lt.s32.totalorder %s540_s9, %s540_s9 }
  0x15   :  { %630 = vmatprep.mubr.msk.f32.mxu0 %vm680_vm3, %v679_v63  ;;  %p661_p2 = scmp.lt.s32.totalorder %s659_s11, %s655_s10 }
  0x16   :  { %255 = vperm.xlu0 %649, %v237_v19   ;;  %v521_v19 = vshrl.u32 %v520_v18, 7 }
  0x17   :  { %250 = vperm.xlu1 %650, %v236_v20   ;;  %p662_p3 = por %p661_p2, %p660_p1 }
  0x18   :  { %v522_v20 = vsub.s32 0, %v521_v19 }
  0x19   :  { %p663_p4 = pnand %p662_p3, %p656_p0 }
  0x1a   :  { %245 = vperm.xlu0 %649, %v235_v21  }
  0x1b   :  { %240 = vperm.xlu1 %650, %v234_v22  }
  0x1e   :  { %362 = vrot.lane.b32.xlu0 %v32_v1, %s678_s23 }
  0x1f   :  { %517 = vperm.xlu1 %650, %v514_v23  }
  0x81   :  { %v87_v26 = vpop.permute.xlu0 %86 }
  0x82   :  { %v77_v28 = vpop.permute.xlu1 %76 }
  0x85   :  { %v82_v31 = vpop.permute.xlu0 %81 }
  0x86   :  { %v72_v33 = vpop.permute.xlu1 %71 }
  0x89   :  { %v67_v37 = vpop.permute.xlu0 %66 }
  0x8a   :  { %v62_v42 = vpop.permute.xlu1 %61 }
  0x8d   :  { %v57_v47 = vpop.permute.xlu0 %56 }
  0x8e   :  { %v52_v50 = vpop.permute.xlu1 %51 }
  0x91   :  { %v256_v60 = vpop.permute.xlu0 %255 }
  0x92   :  { %v251_v2 = vpop.permute.xlu1 %250 }
  0x95   :  { %v246_v61 = vpop.permute.xlu0 %245 }
  0x96   :  { %v241_v10 = vpop.permute.xlu1 %240 }
  0x99   :  { %v363_v62 = vpop.permute.xlu0 %362 }
  0x9a   :  { %629 = vmatpush3.xpose.msk.msra.mxu0 %vm364_vm2, %v363_v62  ;;  %v518_v21 = vpop.permute.xlu1 %517 }
  0x9b   :  { %v523_v23 = vrot.slane %v518_v21, %v522_v20 }
  0x9d   :  { %631 = vmatmul.mubr.msk.f32.vlgmr.msra.gmra.mxu0 %vm364_vm2, %v361_v0 }
  0xc8   :  { %v596_v25 = vpop.f32.mrf.mxu0 }
  0xc9   :  { %v189_v51 = vadd.f32 %v596_v25, %v57_v47 }
  0xca   :  { %v183_v27 = vpop.f32.mrf.mxu0 }
  0xcb   :  { %v184_v53 = vadd.f32 %v183_v27, %v52_v50  ;;  %v223_v55 = vmax.f32 %v189_v51, 0.0 }
  0xcc   :  { %v599_v29 = vpop.f32.mrf.mxu0 }
  0xcd   :  { %v199_v45 = vadd.f32 %v599_v29, %v67_v37  ;;  %v222_v56 = vmax.f32 %v184_v53, 0.0 }
  0xce   :  { %v193_v30 = vpop.f32.mrf.mxu0 }
  0xcf   :  { %v194_v48 = vadd.f32 %v193_v30, %v62_v42  ;;  %v225_v52 = vmax.f32 %v199_v45, 0.0 }
  0xd0   :  { %v602_v32 = vpop.f32.mrf.mxu0 }
  0xd1   :  { %v209_v39 = vadd.f32 %v602_v32, %v77_v28  ;;  %v224_v54 = vmax.f32 %v194_v48, 0.0 }
  0xd2   :  { %v203_v34 = vpop.f32.mrf.mxu0 }
  0xd3   :  { %v204_v43 = vadd.f32 %v203_v34, %v72_v33  ;;  %v227_v46 = vmax.f32 %v209_v39, 0.0 }
  0xd4   :  { %v605_v35 = vpop.f32.mrf.mxu0 }
  0xd5   :  { %v219_v36 = vadd.f32 %v605_v35, %v87_v26  ;;  %v226_v49 = vmax.f32 %v204_v43, 0.0 }
  0xd6   :  { %v213_v38 = vpop.f32.mrf.mxu0 }
  0xd7   :  { %v229_v40 = vmax.f32 %v219_v36, 0.0  ;;  %v214_v41 = vadd.f32 %v213_v38, %v82_v31 }
  0xd9   :  { %v228_v44 = vmax.f32 %v214_v41, 0.0  ;;  %606 = vmatprep.subr.mxu1 %v229_v40 }
  0xda   :  { %607 = vmatpush3.msra.mxu1 %v229_v40 }
  0xdb   :  { %608 = vmatprep.subr.mxu1 %v228_v44 }
  0xdc   :  { %609 = vmatpush3.msra.mxu1 %v228_v44 }
  0xdd   :  { %610 = vmatprep.subr.mxu1 %v227_v46 }
  0xde   :  { %611 = vmatpush3.msra.mxu1 %v227_v46 }
  0xdf   :  { %612 = vmatprep.subr.mxu1 %v226_v49 }
  0xe0   :  { %613 = vmatpush3.msra.mxu1 %v226_v49 }
  0xe1   :  { %614 = vmatprep.subr.mxu1 %v225_v52 }
  0xe2   :  { %615 = vmatpush3.msra.mxu1 %v225_v52 }
  0xe3   :  { %616 = vmatprep.subr.mxu1 %v224_v54 }
  0xe4   :  { %617 = vmatpush3.msra.mxu1 %v224_v54 }
  0xe5   :  { %618 = vmatprep.subr.mxu1 %v223_v55 }
  0xe6   :  { %619 = vmatpush3.msra.mxu1 %v223_v55 }
  0xe7   :  { %620 = vmatprep.subr.mxu1 %v222_v56 }
  0xe8   :  { %621 = vmatpush3.msra.mxu1 %v222_v56 }
  0xe9   :  { %623 = vmatmul.mubr.msk.f32.vlgmr.msra.gmra.mxu1 %vm258_vm1, %v231_v57  ;;  %633 = vmatprep.subr.mxu1 %v679_v63 }
  0xea   :  { %625 = vmatprep.mubr.msk.f32.mxu1 %vm258_vm1, %v232_v58 }
  0xed   :  { %626 = vmatmul.mubr.msk.f32.gmra.mxu1 %vm258_vm1, %v233_v59 }
  0xee   :  { %641 = vmatprep.mubr.msk.f32.mxu1 %vm680_vm3, %v679_v63 }
 0x15d   :  { %v436_v16 = vpop.f32.mrf.mxu0 }
 0x15f   :  { %v632_v17 = vpop.f32.mrf.mxu0 }
 0x1a9   :  { %v624_v1 = vpop.f32.mrf.mxu1 }
 0x1aa   :  { %v343_v7 = vadd.f32 %v624_v1, %v246_v61 }
 0x1ab   :  { %v337_v3 = vpop.f32.mrf.mxu1 }
 0x1ac   :  { %v338_v11 = vadd.f32 %v337_v3, %v241_v10  ;;  %v357_v13 = vmax.f32 %v343_v7, 0.0 }
 0x1ad   :  { %v627_v4 = vpop.f32.mrf.mxu1 }
 0x1ae   :  { %v353_v5 = vadd.f32 %v627_v4, %v256_v60  ;;  %v356_v14 = vmax.f32 %v338_v11, 0.0 }
 0x1af   :  { %v347_v6 = vpop.f32.mrf.mxu1 }
 0x1b0   :  { %v359_v8 = vmax.f32 %v353_v5, 0.0  ;;  %v348_v9 = vadd.f32 %v347_v6, %v251_v2 }
 0x1b2   :  { %v358_v12 = vmax.f32 %v348_v9, 0.0  ;;  %634 = vmatpush3.msra.mxu1 %v359_v8 }
 0x1b3   :  { %635 = vmatprep.subr.mxu1 %v679_v63 }
 0x1b4   :  { %636 = vmatpush3.msra.mxu1 %v358_v12 }
 0x1b5   :  { %637 = vmatprep.subr.mxu1 %v679_v63 }
 0x1b6   :  { %638 = vmatpush3.msra.mxu1 %v357_v13 }
 0x1b7   :  { %639 = vmatprep.subr.mxu1 %v679_v63 }
 0x1b8   :  { %640 = vmatpush3.msra.mxu1 %v356_v14 }
 0x1b9   :  { %642 = vmatmul.mubr.msk.f32.vlgmr.msra.gmra.mxu1 %vm440_vm4, %v360_v15 }
 0x279   :  { %v510_v22 = vpop.f32.mrf.mxu1 }
 0x27a   :  { %v511_v24 = vadd.f32 %v510_v22, %v436_v16 }
 0x27b   :  { %v643_v25 = vpop.f32.mrf.mxu1 }
 0x27c   :  { %v524_v26 = vadd.f32 %v523_v23, %v511_v24 }
 0x27e   :  { %v563_v27 = vmul.f32 -1.442695, %v524_v26 }
 0x280   :  { %651 = vpow2.f32 %v563_v27 }
 0x28d   :  { %v652_v28 = vpop.eup %651 }
 0x28e   :  { %v528_v29 = vadd.f32 1.0, %v652_v28 }
 0x290   :  { %653 = vrcp.f32 %v528_v29 }
 0x29d   :  { %v654_v30 = vpop.eup %653 }
 0x29e   :  { %532 = vst.msk [vmem:[#allocation3] sm:$0x1] %vm531_vm5, %v654_v30 }
 0x29f   :  { %666 = shalt.err (!%p663_p4)
}
 0x2a0   :  { %542 = dma.vmem_to_hbm [thread:$0]  %s540_s9, 16, %s836_s8, [#allocation4]  }
 0x2a1   :  { %675 = dma.done.wait [#allocation4], 16  }
 0x2a2   :  { %676 = vsyncadd [#allocation4], 4294967280 }
 0x2a3   :  { %546 = vsyncpa [#allocation4], 1 }

</bundles_post_ra>
